<compile_context>
chip_gen: v6e
topology: v6e:2x2x1
jax: 0.10.0
libtpu: 0.0.40
codegen_flags: <defaults>
</compile_context>

<pallas_src>
import functools

import jax
import jax.numpy as jnp
from jax.experimental import pallas as pl
from jax.experimental.pallas import tpu as pltpu

_LANE = 128
_SUBLANE = 8


def mlp_kernel(x_ref, w1_ref, b1_ref, w2_ref, b2_ref, o_ref):
    # fc1: (TM, IN)bf16 @ (IN, H)bf16 -> f32 accumulator on the MXU.
    h = jnp.dot(x_ref[...], w1_ref[...], preferred_element_type=jnp.float32)
    # Fused bias + ReLU in f32 (single VPU pass), then one cast for fc2.
    h = jnp.maximum(h + b1_ref[...], 0.0)
    h = h.astype(w2_ref.dtype)
    # fc2: (TM, H)bf16 @ (H, OUT_PAD)bf16 -> f32, bias, store lane-dense f32.
    y = jnp.dot(h, w2_ref[...], preferred_element_type=jnp.float32)
    o_ref[...] = (y + b2_ref[...]).astype(o_ref.dtype)


def _round_up(x, m):
    return ((x + m - 1) // m) * m


@functools.partial(jax.jit, static_argnames=("max_batch_tile",))
def ann_forward(x, w1, b1, w2, b2, *, max_batch_tile=512):
    """x: (B, C, H, W) float32. Returns (B, output_size) float32."""
    batch = x.shape[0]
    x2d = x.reshape(batch, -1)                      # == torch .view(-1, 32*32*3)
    input_size = x2d.shape[1]
    hidden_size = w1.shape[1]
    output_size = w2.shape[1]

    # --- Padding for lane/sublane-friendly layouts ------------------------
    out_pad = _round_up(max(output_size, _LANE), _LANE)        # 10 -> 128
    tm = min(max_batch_tile, _round_up(batch, _SUBLANE))       # batch tile
    b_pad = _round_up(batch, tm)

    if b_pad != batch:
        x2d = jnp.pad(x2d, ((0, b_pad - batch), (0, 0)))
    w2_p = jnp.pad(w2, ((0, 0), (0, out_pad - output_size)))
    b2_p = jnp.pad(b2, (0, out_pad - output_size))

    # --- bf16 matmul operands, f32 biases ---------------------------------
    x_bf = x2d.astype(jnp.bfloat16)
    w1_bf = w1.astype(jnp.bfloat16)
    w2_bf = w2_p.astype(jnp.bfloat16)
    b1_2d = b1.reshape(1, hidden_size).astype(jnp.float32)
    b2_2d = b2_p.reshape(1, out_pad).astype(jnp.float32)

    grid = (pl.cdiv(b_pad, tm),)

    cost = pl.CostEstimate(
        flops=2 * b_pad * input_size * hidden_size
        + 2 * b_pad * hidden_size * out_pad,
        transcendentals=0,
        bytes_accessed=(
            x_bf.size * 2 + w1_bf.size * 2 + w2_bf.size * 2
            + b1_2d.size * 4 + b2_2d.size * 4 + b_pad * out_pad * 4
        ),
    )

    out = pl.pallas_call(
        mlp_kernel,
        out_shape=jax.ShapeDtypeStruct((b_pad, out_pad), jnp.float32),
        grid=grid,
        in_specs=[
            # x is tiled along the batch; tile i+1 is prefetched while tile i
            # computes (BlockSpec auto-pipelining).
            pl.BlockSpec((tm, input_size), lambda i: (i, 0)),
            # Weights/biases: constant index map -> DMA'd once, stay resident.
            pl.BlockSpec((input_size, hidden_size), lambda i: (0, 0)),
            pl.BlockSpec((1, hidden_size), lambda i: (0, 0)),
            pl.BlockSpec((hidden_size, out_pad), lambda i: (0, 0)),
            pl.BlockSpec((1, out_pad), lambda i: (0, 0)),
        ],
        out_specs=pl.BlockSpec((tm, out_pad), lambda i: (i, 0)),
        compiler_params=pltpu.CompilerParams(
            dimension_semantics=("parallel",),      # shard grid across TCs (v7x)
            vmem_limit_bytes=64 * 1024 * 1024,
        ),
        cost_estimate=cost,
    )(x_bf, w1_bf, b1_2d, w2_bf, b2_2d)

    return out[:batch, :output_size]


if __name__ == "__main__":
    # Shapes implied by forward(): x.view(-1, 32*32*3) => input_size = 3072.
    batch = 2
    input_size = 32 * 32 * 3
    hidden_size = 128
    output_size = 10

    key = jax.random.PRNGKey(0)
    kx, kw1, kb1, kw2, kb2 = jax.random.split(key, 5)

    x = jax.random.normal(kx, (batch, 3, 32, 32), dtype=jnp.float32)

    # Deterministic synthetic params (PyTorch-style uniform(-1/sqrt(fan_in), ...)).
    lim1 = 1.0 / jnp.sqrt(jnp.float32(input_size))
    w1 = jax.random.uniform(kw1, (input_size, hidden_size), jnp.float32, -lim1, lim1)
    b1 = jax.random.uniform(kb1, (hidden_size,), jnp.float32, -lim1, lim1)
    lim2 = 1.0 / jnp.sqrt(jnp.float32(hidden_size))
    w2 = jax.random.uniform(kw2, (hidden_size, output_size), jnp.float32, -lim2, lim2)
    b2 = jax.random.uniform(kb2, (output_size,), jnp.float32, -lim2, lim2)

    out = ann_forward(x, w1, b1, w2, b2)
    out = jax.block_until_ready(out)
    assert out.shape == (batch, output_size)

    # Reference 1: same bf16-operand / f32-accumulate math in plain JAX.
    x2d = x.reshape(batch, -1)
    h_ref = jnp.maximum(
        jnp.dot(x2d.astype(jnp.bfloat16), w1.astype(jnp.bfloat16),
                preferred_element_type=jnp.float32) + b1, 0.0)
    ref_bf16 = jnp.dot(h_ref.astype(jnp.bfloat16), w2.astype(jnp.bfloat16),
                       preferred_element_type=jnp.float32) + b2
    assert jnp.allclose(out, ref_bf16, atol=1e-3, rtol=1e-3)

    # Reference 2: full-f32 PyTorch-equivalent math (looser tolerance for bf16
    # matmul inputs).
    ref_f32 = jnp.maximum(x2d @ w1 + b1, 0.0) @ w2 + b2
    assert jnp.allclose(out, ref_f32, atol=5e-2, rtol=5e-2)

    print("KERNEL_OK")
</pallas_src>

<mosaic_0001>
module attributes {stable_mosaic.version = 11 : i64} {
  func.func @mlp_kernel(%arg0: i32, %arg1: memref<8x3072xbf16, #tpu.memory_space<vmem>>, %arg2: memref<3072x128xbf16, #tpu.memory_space<vmem>>, %arg3: memref<1x128xf32, #tpu.memory_space<vmem>>, %arg4: memref<128x128xbf16, #tpu.memory_space<vmem>>, %arg5: memref<1x128xf32, #tpu.memory_space<vmem>>, %arg6: memref<8x128xf32, #tpu.memory_space<vmem>>) attributes {dimension_semantics = [#tpu.dimension_semantics<parallel>], iteration_bounds = array<i64: 1>, scalar_prefetch = 0 : i64, scratch_operands = 0 : i64, tpu.core_type = #tpu.core_type<tc>, window_params = [{transform_indices = @transform_0, window_bounds = array<i64: 8, 3072>}, {pipeline_mode = #tpu.pipeline_mode<synchronous>, transform_indices = @transform_1, window_bounds = array<i64: 3072, 128>}, {pipeline_mode = #tpu.pipeline_mode<synchronous>, transform_indices = @transform_2, window_bounds = array<i64: 1, 128>}, {pipeline_mode = #tpu.pipeline_mode<synchronous>, transform_indices = @transform_3, window_bounds = array<i64: 128, 128>}, {pipeline_mode = #tpu.pipeline_mode<synchronous>, transform_indices = @transform_4, window_bounds = array<i64: 1, 128>}, {transform_indices = @transform_5, window_bounds = array<i64: 8, 128>}]} {
    %c0 = arith.constant 0 : index
    %c0_0 = arith.constant 0 : index
    %0 = vector.load %arg1[%c0, %c0_0] : memref<8x3072xbf16, #tpu.memory_space<vmem>>, vector<8x3072xbf16>
    %c0_1 = arith.constant 0 : index
    %c0_2 = arith.constant 0 : index
    %1 = vector.load %arg2[%c0_1, %c0_2] : memref<3072x128xbf16, #tpu.memory_space<vmem>>, vector<3072x128xbf16>
    %cst = arith.constant dense<0.000000e+00> : vector<8x128xf32>
    %2 = tpu.matmul %0, %1, %cst {dimension_numbers = #tpu.dot_dimension_numbers<[1], [0], [0], [1], [0, 0, 1, 1], [], []>} : vector<8x3072xbf16>, vector<3072x128xbf16>, vector<8x128xf32> -> vector<8x128xf32>
    %c0_3 = arith.constant 0 : index
    %c0_4 = arith.constant 0 : index
    %3 = vector.load %arg3[%c0_3, %c0_4] : memref<1x128xf32, #tpu.memory_space<vmem>>, vector<1x128xf32>
    %4 = vector.broadcast %3 : vector<1x128xf32> to vector<8x128xf32>
    %5 = arith.addf %2, %4 : vector<8x128xf32>
    %cst_5 = arith.constant 0.000000e+00 : f32
    %6 = vector.broadcast %cst_5 : f32 to vector<8x128xf32>
    %7 = arith.maximumf %5, %6 : vector<8x128xf32>
    %8 = arith.truncf %7 : vector<8x128xf32> to vector<8x128xbf16>
    %c0_6 = arith.constant 0 : index
    %c0_7 = arith.constant 0 : index
    %9 = vector.load %arg4[%c0_6, %c0_7] : memref<128x128xbf16, #tpu.memory_space<vmem>>, vector<128x128xbf16>
    %cst_8 = arith.constant dense<0.000000e+00> : vector<8x128xf32>
    %10 = tpu.matmul %8, %9, %cst_8 {dimension_numbers = #tpu.dot_dimension_numbers<[1], [0], [0], [1], [0, 0, 1, 1], [], []>} : vector<8x128xbf16>, vector<128x128xbf16>, vector<8x128xf32> -> vector<8x128xf32>
    %c0_9 = arith.constant 0 : index
    %c0_10 = arith.constant 0 : index
    %11 = vector.load %arg5[%c0_9, %c0_10] : memref<1x128xf32, #tpu.memory_space<vmem>>, vector<1x128xf32>
    %12 = vector.broadcast %11 : vector<1x128xf32> to vector<8x128xf32>
    %13 = arith.addf %10, %12 : vector<8x128xf32>
    %c0_11 = arith.constant 0 : index
    %c0_12 = arith.constant 0 : index
    %14 = vector.load %arg6[%c0_11, %c0_12] : memref<8x128xf32, #tpu.memory_space<vmem>>, vector<8x128xf32>
    tpu.vector_store %arg6[%c0_11, %c0_12], %13 {strides = array<i32>} : memref<8x128xf32, #tpu.memory_space<vmem>>, vector<8x128xf32>,
    return
  }
  func.func @transform_0(%arg0: i32) -> (i32, i32) {
    %c0_i32 = arith.constant 0 : i32
    %c0_i32_0 = arith.constant 0 : i32
    return %arg0, %c0_i32 : i32, i32
  }
  func.func @transform_1(%arg0: i32) -> (i32, i32) {
    %c0_i32 = arith.constant 0 : i32
    %c0_i32_0 = arith.constant 0 : i32
    %c0_i32_1 = arith.constant 0 : i32
    return %c0_i32, %c0_i32_0 : i32, i32
  }
  func.func @transform_2(%arg0: i32) -> (i32, i32) {
    %c0_i32 = arith.constant 0 : i32
    %c0_i32_0 = arith.constant 0 : i32
    %c0_i32_1 = arith.constant 0 : i32
    return %c0_i32, %c0_i32_0 : i32, i32
  }
  func.func @transform_3(%arg0: i32) -> (i32, i32) {
    %c0_i32 = arith.constant 0 : i32
    %c0_i32_0 = arith.constant 0 : i32
    %c0_i32_1 = arith.constant 0 : i32
    return %c0_i32, %c0_i32_0 : i32, i32
  }
  func.func @transform_4(%arg0: i32) -> (i32, i32) {
    %c0_i32 = arith.constant 0 : i32
    %c0_i32_0 = arith.constant 0 : i32
    %c0_i32_1 = arith.constant 0 : i32
    return %c0_i32, %c0_i32_0 : i32, i32
  }
  func.func @transform_5(%arg0: i32) -> (i32, i32) {
    %c0_i32 = arith.constant 0 : i32
    %c0_i32_0 = arith.constant 0 : i32
    return %arg0, %c0_i32 : i32, i32
  }
}

</mosaic_0001>

<bundles_post_ra>
// kernel: ann_forward.1
= control target key start
LH: loop header
LB: loop body
LE: loop exit
PB: predicated region body
PF: predicated region fallthrough
CT: control target
= control target key end

     0   :  { %vm3004_vm0 = vmmov 0   ;;  %s3680_s1 = inlined_call_operand.vmem [shape: bf16[3072,128], index: 1, kind: input, shape index: {}]   ;;  %s3681_s0 = inlined_call_operand.vmem [shape: bf16[8,3072], index: 0, kind: input, shape index: {}]   ;;  %s3682_s2 = inlined_call_operand.vmem [shape: f32[1,128], index: 2, kind: input, shape index: {}]   ;;  %s3683_s3 = inlined_call_operand.vmem [shape: bf16[128,128], index: 3, kind: input, shape index: {}]   ;;  %s3684_s4 = inlined_call_operand.vmem [shape: f32[1,128], index: 4, kind: input, shape index: {}]   ;;  %s3685_s5 = inlined_call_operand.vmem [shape: f32[8,128], index: 5, kind: output, shape index: {}]  }
   0x1   :  { %v2779_v0 = vld [vmem:[%s3680_s1 + $0x78] sm:$0xff]   ;;  %v2783_v4 = vld [vmem:[%s3680_s1 + $0x70] sm:$0xff]   ;;  %v2787_v8 = vld [vmem:[%s3680_s1 + $0x68] sm:$0xff]  }
   0x2   :  { %v2780_v1 = vld [vmem:[%s3680_s1 + $0xf8] sm:$0xff]   ;;  %2484 = vmatprep.subr.bf16.mxu0 %v2779_v0  ;;  %v2784_v5 = vld [vmem:[%s3680_s1 + $0xf0] sm:$0xff]   ;;  %v2788_v9 = vld [vmem:[%s3680_s1 + $0xe8] sm:$0xff]  }
   0x3   :  { %v2781_v2 = vld [vmem:[%s3680_s1 + $0x38] sm:$0xff]   ;;  %2506 = vmatprep.subr.bf16.mxu1 %v2780_v1  ;;  %v2785_v6 = vld [vmem:[%s3680_s1 + $0x30] sm:$0xff]   ;;  %v2789_v10 = vld [vmem:[%s3680_s1 + $0x28] sm:$0xff]  }
   0x4   :  { %v2782_v3 = vld [vmem:[%s3680_s1 + $0xb8] sm:$0xff]   ;;  %2485 = vmatpush3.bf16.msra.mxu0 %v2781_v2  ;;  %v2786_v7 = vld [vmem:[%s3680_s1 + $0xb0] sm:$0xff]   ;;  %v2790_v11 = vld [vmem:[%s3680_s1 + $0xa8] sm:$0xff]  }
   0x5   :  { %2507 = vmatpush3.bf16.msra.mxu1 %v2782_v3  ;;  %2486 = vmatprep.subr.bf16.mxu0 %v2783_v4  ;;  %v2791_v12 = vld [vmem:[%s3680_s1 + $0x60] sm:$0xff]   ;;  %v2795_v16 = vld [vmem:[%s3680_s1 + $0x58] sm:$0xff]   ;;  %v2799_v20 = vld [vmem:[%s3680_s1 + $0x50] sm:$0xff]  }
   0x6   :  { %2508 = vmatprep.subr.bf16.mxu1 %v2784_v5  ;;  %v2792_v13 = vld [vmem:[%s3680_s1 + $0xe0] sm:$0xff]   ;;  %v2796_v17 = vld [vmem:[%s3680_s1 + $0xd8] sm:$0xff]   ;;  %v2800_v21 = vld [vmem:[%s3680_s1 + $0xd0] sm:$0xff]  }
   0x7   :  { %v2793_v14 = vld [vmem:[%s3680_s1 + $0x20] sm:$0xff]   ;;  %v2797_v18 = vld [vmem:[%s3680_s1 + $0x18] sm:$0xff]   ;;  %v2801_v22 = vld [vmem:[%s3680_s1 + $0x10] sm:$0xff]  }
   0x8   :  { %2487 = vmatpush3.bf16.msra.mxu0 %v2785_v6  ;;  %v2794_v15 = vld [vmem:[%s3680_s1 + $0xa0] sm:$0xff]   ;;  %v2798_v19 = vld [vmem:[%s3680_s1 + $0x98] sm:$0xff]   ;;  %v2802_v23 = vld [vmem:[%s3680_s1 + $0x90] sm:$0xff]  }
   0x9   :  { %2509 = vmatpush3.bf16.msra.mxu1 %v2786_v7  ;;  %2488 = vmatprep.subr.bf16.mxu0 %v2787_v8  ;;  %v2803_v24 = vld [vmem:[%s3680_s1 + $0x48] sm:$0xff]   ;;  %v2807_v28 = vld [vmem:[%s3680_s1 + $0x40] sm:$0xff]   ;;  %v2815_v38 = vld [vmem:[%s3680_s1 + $0x178] sm:$0xff]  }
   0xa   :  { %2510 = vmatprep.subr.bf16.mxu1 %v2788_v9  ;;  %v2804_v25 = vld [vmem:[%s3680_s1 + $0xc8] sm:$0xff]   ;;  %v2808_v29 = vld [vmem:[%s3680_s1 + $0xc0] sm:$0xff]   ;;  %v2816_v39 = vld [vmem:[%s3680_s1 + $0x1f8] sm:$0xff]  }
   0xb   :  { %v2805_v26 = vld [vmem:[%s3680_s1 + $0x8] sm:$0xff]   ;;  %v2809_v30 = vld [vmem:[%s3680_s1] sm:$0xff]   ;;  %v2817_v40 = vld [vmem:[%s3680_s1 + $0x138] sm:$0xff]  }
   0xc   :  { %2489 = vmatpush3.bf16.msra.mxu0 %v2789_v10  ;;  %v2806_v27 = vld [vmem:[%s3680_s1 + $0x88] sm:$0xff]   ;;  %v2810_v31 = vld [vmem:[%s3680_s1 + $0x80] sm:$0xff]   ;;  %v2818_v41 = vld [vmem:[%s3680_s1 + $0x1b8] sm:$0xff]  }
   0xd   :  { %2511 = vmatpush3.bf16.msra.mxu1 %v2790_v11  ;;  %2490 = vmatprep.subr.bf16.mxu0 %v2791_v12  ;;  %v21_v32 = vld [vmem:[%s3681_s0] sm:$0xff]  ;;  %v22_v33 = vld [vmem:[%s3681_s0 + $0x8] sm:$0xff]  ;;  %v2819_v42 = vld [vmem:[%s3680_s1 + $0x170] sm:$0xff]  }
   0xe   :  { %2512 = vmatprep.subr.bf16.mxu1 %v2792_v13  ;;  %v2259_v34 = vcombine.low %v21_v32, %v21_v32  ;;  %v2260_v35 = vcombine.high %v21_v32, %v21_v32  ;;  %v2261_v36 = vcombine.low %v22_v33, %v22_v33  ;;  %v2262_v37 = vcombine.high %v22_v33, %v22_v33  ;;  %v2820_v43 = vld [vmem:[%s3680_s1 + $0x1f0] sm:$0xff]   ;;  %v2823_v46 = vld [vmem:[%s3680_s1 + $0x168] sm:$0xff]   ;;  %v2827_v50 = vld [vmem:[%s3680_s1 + $0x160] sm:$0xff]  }
   0xf   :  { %v2821_v44 = vld [vmem:[%s3680_s1 + $0x130] sm:$0xff]   ;;  %v2824_v47 = vld [vmem:[%s3680_s1 + $0x1e8] sm:$0xff]   ;;  %v2828_v51 = vld [vmem:[%s3680_s1 + $0x1e0] sm:$0xff]  }
  0x10   :  { %2491 = vmatpush3.bf16.msra.mxu0 %v2793_v14  ;;  %1692 = vmatprep.mubr.bf16.mxu0 %v2260_v35  ;;  %v2822_v45 = vld [vmem:[%s3680_s1 + $0x1b0] sm:$0xff]   ;;  %v2825_v48 = vld [vmem:[%s3680_s1 + $0x128] sm:$0xff]   ;;  %v2829_v52 = vld [vmem:[%s3680_s1 + $0x120] sm:$0xff]  }
  0x11   :  { %2513 = vmatpush3.bf16.msra.mxu1 %v2794_v15  ;;  %2492 = vmatprep.subr.bf16.mxu0 %v2795_v16  ;;  %v2826_v49 = vld [vmem:[%s3680_s1 + $0x1a8] sm:$0xff]   ;;  %v2830_v53 = vld [vmem:[%s3680_s1 + $0x1a0] sm:$0xff]   ;;  %v2831_v54 = vld [vmem:[%s3680_s1 + $0x158] sm:$0xff]  }
  0x12   :  { %2514 = vmatprep.subr.bf16.mxu1 %v2796_v17  ;;  %1732 = vmatprep.mubr.bf16.mxu1 %v2262_v37  ;;  %v2832_v55 = vld [vmem:[%s3680_s1 + $0x1d8] sm:$0xff]   ;;  %v2835_v58 = vld [vmem:[%s3680_s1 + $0x150] sm:$0xff]   ;;  %v2839_v62 = vld [vmem:[%s3680_s1 + $0x148] sm:$0xff]  }
  0x13   :  { %v2833_v56 = vld [vmem:[%s3680_s1 + $0x118] sm:$0xff]   ;;  %v2836_v59 = vld [vmem:[%s3680_s1 + $0x1d0] sm:$0xff]   ;;  %v2840_v63 = vld [vmem:[%s3680_s1 + $0x1c8] sm:$0xff]  }
  0x14   :  { %2493 = vmatpush3.bf16.msra.mxu0 %v2797_v18  ;;  %v2834_v57 = vld [vmem:[%s3680_s1 + $0x198] sm:$0xff]   ;;  %v2837_v60 = vld [vmem:[%s3680_s1 + $0x110] sm:$0xff]   ;;  %v2841_v0 = vld [vmem:[%s3680_s1 + $0x108] sm:$0xff]  }
  0x15   :  { %2515 = vmatpush3.bf16.msra.mxu1 %v2798_v19  ;;  %2494 = vmatprep.subr.bf16.mxu0 %v2799_v20  ;;  %v2838_v61 = vld [vmem:[%s3680_s1 + $0x190] sm:$0xff]   ;;  %v2842_v1 = vld [vmem:[%s3680_s1 + $0x188] sm:$0xff]   ;;  %v2843_v2 = vld [vmem:[%s3680_s1 + $0x140] sm:$0xff]  }
  0x16   :  { %2516 = vmatprep.subr.bf16.mxu1 %v2800_v21  ;;  %v2844_v3 = vld [vmem:[%s3680_s1 + $0x1c0] sm:$0xff]   ;;  %v23_v6 = vld [vmem:[%s3681_s0 + $0x10] sm:$0xff]  ;;  %v24_v9 = vld [vmem:[%s3681_s0 + $0x18] sm:$0xff] }
  0x17   :  { %v2845_v4 = vld [vmem:[%s3680_s1 + $0x100] sm:$0xff]   ;;  %v2263_v7 = vcombine.low %v23_v6, %v23_v6  ;;  %v2264_v8 = vcombine.high %v23_v6, %v23_v6  ;;  %v2265_v10 = vcombine.low %v24_v9, %v24_v9  ;;  %v2266_v11 = vcombine.high %v24_v9, %v24_v9  ;;  %v2851_v12 = vld [vmem:[%s3680_s1 + $0x278] sm:$0xff]   ;;  %v2855_v16 = vld [vmem:[%s3680_s1 + $0x270] sm:$0xff]  }
  0x18   :  { %2495 = vmatpush3.bf16.msra.mxu0 %v2801_v22  ;;  %v2846_v5 = vld [vmem:[%s3680_s1 + $0x180] sm:$0xff]   ;;  %v2852_v13 = vld [vmem:[%s3680_s1 + $0x2f8] sm:$0xff]   ;;  %v2856_v17 = vld [vmem:[%s3680_s1 + $0x2f0] sm:$0xff]  }
  0x19   :  { %2517 = vmatpush3.bf16.msra.mxu1 %v2802_v23  ;;  %2496 = vmatprep.subr.bf16.mxu0 %v2803_v24  ;;  %v2853_v14 = vld [vmem:[%s3680_s1 + $0x238] sm:$0xff]   ;;  %v2857_v18 = vld [vmem:[%s3680_s1 + $0x230] sm:$0xff]   ;;  %v2859_v20 = vld [vmem:[%s3680_s1 + $0x268] sm:$0xff]  }
  0x1a   :  { %2518 = vmatprep.subr.bf16.mxu1 %v2804_v25  ;;  %v2854_v15 = vld [vmem:[%s3680_s1 + $0x2b8] sm:$0xff]   ;;  %v2858_v19 = vld [vmem:[%s3680_s1 + $0x2b0] sm:$0xff]   ;;  %v2860_v21 = vld [vmem:[%s3680_s1 + $0x2e8] sm:$0xff]  }
  0x1b   :  { %v2861_v22 = vld [vmem:[%s3680_s1 + $0x228] sm:$0xff]   ;;  %v2863_v24 = vld [vmem:[%s3680_s1 + $0x260] sm:$0xff]   ;;  %v2871_v32 = vld [vmem:[%s3680_s1 + $0x250] sm:$0xff]  }
  0x1c   :  { %2497 = vmatpush3.bf16.msra.mxu0 %v2805_v26  ;;  %v2862_v23 = vld [vmem:[%s3680_s1 + $0x2a8] sm:$0xff]   ;;  %v2864_v25 = vld [vmem:[%s3680_s1 + $0x2e0] sm:$0xff]   ;;  %v2872_v33 = vld [vmem:[%s3680_s1 + $0x2d0] sm:$0xff]  }
  0x1d   :  { %2519 = vmatpush3.bf16.msra.mxu1 %v2806_v27  ;;  %2498 = vmatprep.subr.bf16.mxu0 %v2807_v28  ;;  %v2865_v26 = vld [vmem:[%s3680_s1 + $0x220] sm:$0xff]   ;;  %v2867_v28 = vld [vmem:[%s3680_s1 + $0x258] sm:$0xff]   ;;  %v2874_v35 = vld [vmem:[%s3680_s1 + $0x290] sm:$0xff]  }
  0x1e   :  { %2520 = vmatprep.subr.bf16.mxu1 %v2808_v29  ;;  %v2866_v27 = vld [vmem:[%s3680_s1 + $0x2a0] sm:$0xff]   ;;  %v2868_v29 = vld [vmem:[%s3680_s1 + $0x2d8] sm:$0xff]   ;;  %v2876_v37 = vld [vmem:[%s3680_s1 + $0x2c8] sm:$0xff]  }
  0x1f   :  { %v2907_v6 = vld [vmem:[%s3680_s1 + $0x350] sm:$0xff]  }
  0x20   :  { %2499 = vmatpush3.bf16.msra.mxu0 %v2809_v30  ;;  %v2869_v30 = vld [vmem:[%s3680_s1 + $0x218] sm:$0xff]   ;;  %v2910_v9 = vld [vmem:[%s3680_s1 + $0x390] sm:$0xff]  }
  0x21   :  { %2521 = vmatpush3.bf16.msra.mxu1 %v2810_v31  ;;  %2528 = vmatprep.subr.bf16.mxu0 %v2815_v38  ;;  %v2870_v31 = vld [vmem:[%s3680_s1 + $0x298] sm:$0xff]   ;;  %v2877_v38 = vld [vmem:[%s3680_s1 + $0x208] sm:$0xff]  }
  0x22   :  { %2550 = vmatprep.subr.bf16.mxu1 %v2816_v39  ;;  %v2878_v39 = vld [vmem:[%s3680_s1 + $0x288] sm:$0xff]  }
  0x23   :  { %1693 = vmatmul.mubr.bf16.vlgmr.msra.gmra.mxu0 %v2259_v34  ;;  %v2873_v34 = vld [vmem:[%s3680_s1 + $0x210] sm:$0xff]  }
  0x24   :  { %1733 = vmatmul.mubr.bf16.vlgmr.msra.gmra.mxu1 %v2261_v36  ;;  %2529 = vmatpush3.bf16.msra.mxu0 %v2817_v40  ;;  %v2875_v36 = vld [vmem:[%s3680_s1 + $0x248] sm:$0xff]   ;;  %v2879_v40 = vld [vmem:[%s3680_s1 + $0x240] sm:$0xff]  }
  0x25   :  { %2551 = vmatpush3.bf16.msra.mxu1 %v2818_v41  ;;  %2530 = vmatprep.subr.bf16.mxu0 %v2819_v42  ;;  %v2880_v41 = vld [vmem:[%s3680_s1 + $0x2c0] sm:$0xff]  }
  0x26   :  { %2552 = vmatprep.subr.bf16.mxu1 %v2820_v43  ;;  %1772 = vmatprep.mubr.bf16.mxu0 %v2264_v8  ;;  %v2881_v42 = vld [vmem:[%s3680_s1 + $0x200] sm:$0xff]   ;;  %v2909_v8 = vld [vmem:[%s3680_s1 + $0x310] sm:$0xff]  }
  0x27   :  { %1812 = vmatprep.mubr.bf16.mxu1 %v2266_v11  ;;  %v2882_v43 = vld [vmem:[%s3680_s1 + $0x280] sm:$0xff]   ;;  %v2912_v11 = vld [vmem:[%s3680_s1 + $0x3c8] sm:$0xff]  }
  0x28   :  { %2531 = vmatpush3.bf16.msra.mxu0 %v2821_v44  ;;  %v25_v44 = vld [vmem:[%s3681_s0 + $0x20] sm:$0xff] }
  0x29   :  { %2553 = vmatpush3.bf16.msra.mxu1 %v2822_v45  ;;  %2532 = vmatprep.subr.bf16.mxu0 %v2823_v46  ;;  %v26_v45 = vld [vmem:[%s3681_s0 + $0x28] sm:$0xff]  ;;  %v2267_v46 = vcombine.low %v25_v44, %v25_v44 }
  0x2a   :  { %2554 = vmatprep.subr.bf16.mxu1 %v2824_v47  ;;  %v2268_v47 = vcombine.high %v25_v44, %v25_v44  ;;  %v2943_v44 = vld [vmem:[%s3680_s1 + $0x450] sm:$0xff]  }
  0x2c   :  { %2533 = vmatpush3.bf16.msra.mxu0 %v2825_v48  ;;  %v2269_v48 = vcombine.low %v26_v45, %v26_v45 }
  0x2d   :  { %2555 = vmatpush3.bf16.msra.mxu1 %v2826_v49  ;;  %2534 = vmatprep.subr.bf16.mxu0 %v2827_v50  ;;  %v2270_v49 = vcombine.high %v26_v45, %v26_v45  ;;  %v2887_v50 = vld [vmem:[%s3680_s1 + $0x378] sm:$0xff]   ;;  %v2944_v45 = vld [vmem:[%s3680_s1 + $0x4d0] sm:$0xff]  }
  0x2e   :  { %2556 = vmatprep.subr.bf16.mxu1 %v2828_v51  ;;  %v2888_v51 = vld [vmem:[%s3680_s1 + $0x3f8] sm:$0xff]  }
  0x30   :  { %2535 = vmatpush3.bf16.msra.mxu0 %v2829_v52  ;;  %v2889_v52 = vld [vmem:[%s3680_s1 + $0x338] sm:$0xff]  }
  0x31   :  { %2557 = vmatpush3.bf16.msra.mxu1 %v2830_v53  ;;  %2536 = vmatprep.subr.bf16.mxu0 %v2831_v54  ;;  %v2890_v53 = vld [vmem:[%s3680_s1 + $0x3b8] sm:$0xff]   ;;  %v2891_v54 = vld [vmem:[%s3680_s1 + $0x370] sm:$0xff]  }
  0x32   :  { %2558 = vmatprep.subr.bf16.mxu1 %v2832_v55  ;;  %v2892_v55 = vld [vmem:[%s3680_s1 + $0x3f0] sm:$0xff]  }
  0x34   :  { %2537 = vmatpush3.bf16.msra.mxu0 %v2833_v56  ;;  %v2893_v56 = vld [vmem:[%s3680_s1 + $0x330] sm:$0xff]  }
  0x35   :  { %2559 = vmatpush3.bf16.msra.mxu1 %v2834_v57  ;;  %2538 = vmatprep.subr.bf16.mxu0 %v2835_v58  ;;  %v2894_v57 = vld [vmem:[%s3680_s1 + $0x3b0] sm:$0xff]   ;;  %v2895_v58 = vld [vmem:[%s3680_s1 + $0x368] sm:$0xff]  }
  0x36   :  { %2560 = vmatprep.subr.bf16.mxu1 %v2836_v59  ;;  %v2896_v59 = vld [vmem:[%s3680_s1 + $0x3e8] sm:$0xff]  }
  0x38   :  { %2539 = vmatpush3.bf16.msra.mxu0 %v2837_v60  ;;  %v2897_v60 = vld [vmem:[%s3680_s1 + $0x328] sm:$0xff]  }
  0x39   :  { %2561 = vmatpush3.bf16.msra.mxu1 %v2838_v61  ;;  %2540 = vmatprep.subr.bf16.mxu0 %v2839_v62  ;;  %v2898_v61 = vld [vmem:[%s3680_s1 + $0x3a8] sm:$0xff]   ;;  %v2899_v62 = vld [vmem:[%s3680_s1 + $0x360] sm:$0xff]  }
  0x3a   :  { %2562 = vmatprep.subr.bf16.mxu1 %v2840_v63  ;;  %v2900_v63 = vld [vmem:[%s3680_s1 + $0x3e0] sm:$0xff]  }
  0x3c   :  { %2541 = vmatpush3.bf16.msra.mxu0 %v2841_v0  ;;  %v2901_v0 = vld [vmem:[%s3680_s1 + $0x320] sm:$0xff]  }
  0x3d   :  { %2563 = vmatpush3.bf16.msra.mxu1 %v2842_v1  ;;  %2542 = vmatprep.subr.bf16.mxu0 %v2843_v2  ;;  %v2902_v1 = vld [vmem:[%s3680_s1 + $0x3a0] sm:$0xff]   ;;  %v2903_v2 = vld [vmem:[%s3680_s1 + $0x358] sm:$0xff]  }
  0x3e   :  { %2564 = vmatprep.subr.bf16.mxu1 %v2844_v3  ;;  %v2904_v3 = vld [vmem:[%s3680_s1 + $0x3d8] sm:$0xff]  }
  0x40   :  { %2543 = vmatpush3.bf16.msra.mxu0 %v2845_v4  ;;  %v2905_v4 = vld [vmem:[%s3680_s1 + $0x318] sm:$0xff]  }
  0x41   :  { %2565 = vmatpush3.bf16.msra.mxu1 %v2846_v5  ;;  %2572 = vmatprep.subr.bf16.mxu0 %v2851_v12  ;;  %v2906_v5 = vld [vmem:[%s3680_s1 + $0x398] sm:$0xff]   ;;  %v2913_v12 = vld [vmem:[%s3680_s1 + $0x308] sm:$0xff]  }
  0x42   :  { %2594 = vmatprep.subr.bf16.mxu1 %v2852_v13  ;;  %v2914_v13 = vld [vmem:[%s3680_s1 + $0x388] sm:$0xff]  }
  0x43   :  { %1773 = vmatmul.mubr.bf16.vlgmr.msra.gmra.mxu0 %v2263_v7  ;;  %v2908_v7 = vld [vmem:[%s3680_s1 + $0x3d0] sm:$0xff]  }
  0x44   :  { %1813 = vmatmul.mubr.bf16.vlgmr.msra.gmra.mxu1 %v2265_v10  ;;  %2573 = vmatpush3.bf16.msra.mxu0 %v2853_v14  ;;  %v2911_v10 = vld [vmem:[%s3680_s1 + $0x348] sm:$0xff]   ;;  %v2915_v14 = vld [vmem:[%s3680_s1 + $0x340] sm:$0xff]  }
  0x45   :  { %2595 = vmatpush3.bf16.msra.mxu1 %v2854_v15  ;;  %2574 = vmatprep.subr.bf16.mxu0 %v2855_v16  ;;  %v2916_v15 = vld [vmem:[%s3680_s1 + $0x3c0] sm:$0xff]  }
  0x46   :  { %2596 = vmatprep.subr.bf16.mxu1 %v2856_v17  ;;  %1852 = vmatprep.mubr.bf16.mxu0 %v2268_v47  ;;  %v2917_v16 = vld [vmem:[%s3680_s1 + $0x300] sm:$0xff]   ;;  %v2946_v47 = vld [vmem:[%s3680_s1 + $0x490] sm:$0xff]  }
  0x47   :  { %1892 = vmatprep.mubr.bf16.mxu1 %v2270_v49  ;;  %v2918_v17 = vld [vmem:[%s3680_s1 + $0x380] sm:$0xff]   ;;  %v2948_v49 = vld [vmem:[%s3680_s1 + $0x4c8] sm:$0xff]  }
  0x48   :  { %2575 = vmatpush3.bf16.msra.mxu0 %v2857_v18  ;;  %v27_v18 = vld [vmem:[%s3681_s0 + $0x30] sm:$0xff] }
  0x49   :  { %2597 = vmatpush3.bf16.msra.mxu1 %v2858_v19  ;;  %2576 = vmatprep.subr.bf16.mxu0 %v2859_v20  ;;  %v28_v19 = vld [vmem:[%s3681_s0 + $0x38] sm:$0xff]  ;;  %v2271_v20 = vcombine.low %v27_v18, %v27_v18 }
  0x4a   :  { %2598 = vmatprep.subr.bf16.mxu1 %v2860_v21  ;;  %v2272_v21 = vcombine.high %v27_v18, %v27_v18  ;;  %v2979_v18 = vld [vmem:[%s3680_s1 + $0x550] sm:$0xff]  }
  0x4c   :  { %2577 = vmatpush3.bf16.msra.mxu0 %v2861_v22  ;;  %v2273_v22 = vcombine.low %v28_v19, %v28_v19 }
  0x4d   :  { %2599 = vmatpush3.bf16.msra.mxu1 %v2862_v23  ;;  %2578 = vmatprep.subr.bf16.mxu0 %v2863_v24  ;;  %v2923_v23 = vld [vmem:[%s3680_s1 + $0x478] sm:$0xff]   ;;  %v2274_v24 = vcombine.high %v28_v19, %v28_v19  ;;  %v2980_v19 = vld [vmem:[%s3680_s1 + $0x5d0] sm:$0xff]  }
  0x4e   :  { %2600 = vmatprep.subr.bf16.mxu1 %v2864_v25  ;;  %v2924_v25 = vld [vmem:[%s3680_s1 + $0x4f8] sm:$0xff]  }
  0x50   :  { %2579 = vmatpush3.bf16.msra.mxu0 %v2865_v26  ;;  %v2925_v26 = vld [vmem:[%s3680_s1 + $0x438] sm:$0xff]  }
  0x51   :  { %2601 = vmatpush3.bf16.msra.mxu1 %v2866_v27  ;;  %2580 = vmatprep.subr.bf16.mxu0 %v2867_v28  ;;  %v2926_v27 = vld [vmem:[%s3680_s1 + $0x4b8] sm:$0xff]   ;;  %v2927_v28 = vld [vmem:[%s3680_s1 + $0x470] sm:$0xff]  }
  0x52   :  { %2602 = vmatprep.subr.bf16.mxu1 %v2868_v29  ;;  %v2928_v29 = vld [vmem:[%s3680_s1 + $0x4f0] sm:$0xff]  }
  0x54   :  { %2581 = vmatpush3.bf16.msra.mxu0 %v2869_v30  ;;  %v2929_v30 = vld [vmem:[%s3680_s1 + $0x430] sm:$0xff]  }
  0x55   :  { %2603 = vmatpush3.bf16.msra.mxu1 %v2870_v31  ;;  %2582 = vmatprep.subr.bf16.mxu0 %v2871_v32  ;;  %v2930_v31 = vld [vmem:[%s3680_s1 + $0x4b0] sm:$0xff]   ;;  %v2931_v32 = vld [vmem:[%s3680_s1 + $0x468] sm:$0xff]  }
  0x56   :  { %2604 = vmatprep.subr.bf16.mxu1 %v2872_v33  ;;  %v2932_v33 = vld [vmem:[%s3680_s1 + $0x4e8] sm:$0xff]  }
  0x58   :  { %2583 = vmatpush3.bf16.msra.mxu0 %v2873_v34  ;;  %v2933_v34 = vld [vmem:[%s3680_s1 + $0x428] sm:$0xff]  }
  0x59   :  { %2605 = vmatpush3.bf16.msra.mxu1 %v2874_v35  ;;  %2584 = vmatprep.subr.bf16.mxu0 %v2875_v36  ;;  %v2934_v35 = vld [vmem:[%s3680_s1 + $0x4a8] sm:$0xff]   ;;  %v2935_v36 = vld [vmem:[%s3680_s1 + $0x460] sm:$0xff]  }
  0x5a   :  { %2606 = vmatprep.subr.bf16.mxu1 %v2876_v37  ;;  %v2936_v37 = vld [vmem:[%s3680_s1 + $0x4e0] sm:$0xff]  }
  0x5c   :  { %2585 = vmatpush3.bf16.msra.mxu0 %v2877_v38  ;;  %v2937_v38 = vld [vmem:[%s3680_s1 + $0x420] sm:$0xff]  }
  0x5d   :  { %2607 = vmatpush3.bf16.msra.mxu1 %v2878_v39  ;;  %2586 = vmatprep.subr.bf16.mxu0 %v2879_v40  ;;  %v2938_v39 = vld [vmem:[%s3680_s1 + $0x4a0] sm:$0xff]   ;;  %v2939_v40 = vld [vmem:[%s3680_s1 + $0x458] sm:$0xff]  }
  0x5e   :  { %2608 = vmatprep.subr.bf16.mxu1 %v2880_v41  ;;  %v2940_v41 = vld [vmem:[%s3680_s1 + $0x4d8] sm:$0xff]  }
  0x60   :  { %2587 = vmatpush3.bf16.msra.mxu0 %v2881_v42  ;;  %v2941_v42 = vld [vmem:[%s3680_s1 + $0x418] sm:$0xff]  }
  0x61   :  { %2609 = vmatpush3.bf16.msra.mxu1 %v2882_v43  ;;  %2616 = vmatprep.subr.bf16.mxu0 %v2887_v50  ;;  %v2942_v43 = vld [vmem:[%s3680_s1 + $0x498] sm:$0xff]   ;;  %v2949_v50 = vld [vmem:[%s3680_s1 + $0x408] sm:$0xff]  }
  0x62   :  { %2638 = vmatprep.subr.bf16.mxu1 %v2888_v51  ;;  %v2950_v51 = vld [vmem:[%s3680_s1 + $0x488] sm:$0xff]  }
  0x63   :  { %1853 = vmatmul.mubr.bf16.vlgmr.msra.gmra.mxu0 %v2267_v46  ;;  %v2945_v46 = vld [vmem:[%s3680_s1 + $0x410] sm:$0xff]  }
  0x64   :  { %1893 = vmatmul.mubr.bf16.vlgmr.msra.gmra.mxu1 %v2269_v48  ;;  %2617 = vmatpush3.bf16.msra.mxu0 %v2889_v52  ;;  %v2947_v48 = vld [vmem:[%s3680_s1 + $0x448] sm:$0xff]   ;;  %v2951_v52 = vld [vmem:[%s3680_s1 + $0x440] sm:$0xff]  }
  0x65   :  { %2639 = vmatpush3.bf16.msra.mxu1 %v2890_v53  ;;  %2618 = vmatprep.subr.bf16.mxu0 %v2891_v54  ;;  %v2952_v53 = vld [vmem:[%s3680_s1 + $0x4c0] sm:$0xff]  }
  0x66   :  { %2640 = vmatprep.subr.bf16.mxu1 %v2892_v55  ;;  %1932 = vmatprep.mubr.bf16.mxu0 %v2272_v21  ;;  %v2953_v54 = vld [vmem:[%s3680_s1 + $0x400] sm:$0xff]   ;;  %v2982_v21 = vld [vmem:[%s3680_s1 + $0x590] sm:$0xff]  }
  0x67   :  { %1972 = vmatprep.mubr.bf16.mxu1 %v2274_v24  ;;  %v2954_v55 = vld [vmem:[%s3680_s1 + $0x480] sm:$0xff]   ;;  %v2985_v24 = vld [vmem:[%s3680_s1 + $0x508] sm:$0xff]  }
  0x68   :  { %2619 = vmatpush3.bf16.msra.mxu0 %v2893_v56  ;;  %v29_v56 = vld [vmem:[%s3681_s0 + $0x40] sm:$0xff] }
  0x69   :  { %2641 = vmatpush3.bf16.msra.mxu1 %v2894_v57  ;;  %2620 = vmatprep.subr.bf16.mxu0 %v2895_v58  ;;  %v2275_v57 = vcombine.low %v29_v56, %v29_v56  ;;  %v2276_v58 = vcombine.high %v29_v56, %v29_v56 }
  0x6a   :  { %2642 = vmatprep.subr.bf16.mxu1 %v2896_v59  ;;  %v30_v59 = vld [vmem:[%s3681_s0 + $0x48] sm:$0xff] }
  0x6c   :  { %2621 = vmatpush3.bf16.msra.mxu0 %v2897_v60  ;;  %v2277_v60 = vcombine.low %v30_v59, %v30_v59 }
  0x6d   :  { %2643 = vmatpush3.bf16.msra.mxu1 %v2898_v61  ;;  %2622 = vmatprep.subr.bf16.mxu0 %v2899_v62  ;;  %v2278_v61 = vcombine.high %v30_v59, %v30_v59  ;;  %v2959_v62 = vld [vmem:[%s3680_s1 + $0x578] sm:$0xff]  }
  0x6e   :  { %2644 = vmatprep.subr.bf16.mxu1 %v2900_v63  ;;  %v2960_v63 = vld [vmem:[%s3680_s1 + $0x5f8] sm:$0xff]  }
  0x70   :  { %2623 = vmatpush3.bf16.msra.mxu0 %v2901_v0  ;;  %v2961_v0 = vld [vmem:[%s3680_s1 + $0x538] sm:$0xff]  }
  0x71   :  { %2645 = vmatpush3.bf16.msra.mxu1 %v2902_v1  ;;  %2624 = vmatprep.subr.bf16.mxu0 %v2903_v2  ;;  %v2962_v1 = vld [vmem:[%s3680_s1 + $0x5b8] sm:$0xff]   ;;  %v2963_v2 = vld [vmem:[%s3680_s1 + $0x570] sm:$0xff]  }
  0x72   :  { %2646 = vmatprep.subr.bf16.mxu1 %v2904_v3  ;;  %v2964_v3 = vld [vmem:[%s3680_s1 + $0x5f0] sm:$0xff]  }
  0x74   :  { %2625 = vmatpush3.bf16.msra.mxu0 %v2905_v4  ;;  %v2965_v4 = vld [vmem:[%s3680_s1 + $0x530] sm:$0xff]  }
  0x75   :  { %2647 = vmatpush3.bf16.msra.mxu1 %v2906_v5  ;;  %2626 = vmatprep.subr.bf16.mxu0 %v2907_v6  ;;  %v2966_v5 = vld [vmem:[%s3680_s1 + $0x5b0] sm:$0xff]   ;;  %v2967_v6 = vld [vmem:[%s3680_s1 + $0x568] sm:$0xff]  }
  0x76   :  { %2648 = vmatprep.subr.bf16.mxu1 %v2908_v7  ;;  %v2968_v7 = vld [vmem:[%s3680_s1 + $0x5e8] sm:$0xff]  }
  0x78   :  { %2627 = vmatpush3.bf16.msra.mxu0 %v2909_v8  ;;  %v2969_v8 = vld [vmem:[%s3680_s1 + $0x528] sm:$0xff]  }
  0x79   :  { %2649 = vmatpush3.bf16.msra.mxu1 %v2910_v9  ;;  %2628 = vmatprep.subr.bf16.mxu0 %v2911_v10  ;;  %v2970_v9 = vld [vmem:[%s3680_s1 + $0x5a8] sm:$0xff]   ;;  %v2971_v10 = vld [vmem:[%s3680_s1 + $0x560] sm:$0xff]  }
  0x7a   :  { %2650 = vmatprep.subr.bf16.mxu1 %v2912_v11  ;;  %v2972_v11 = vld [vmem:[%s3680_s1 + $0x5e0] sm:$0xff]  }
  0x7c   :  { %2629 = vmatpush3.bf16.msra.mxu0 %v2913_v12  ;;  %v2973_v12 = vld [vmem:[%s3680_s1 + $0x520] sm:$0xff]  }
  0x7d   :  { %2651 = vmatpush3.bf16.msra.mxu1 %v2914_v13  ;;  %2630 = vmatprep.subr.bf16.mxu0 %v2915_v14  ;;  %v2974_v13 = vld [vmem:[%s3680_s1 + $0x5a0] sm:$0xff]   ;;  %v2975_v14 = vld [vmem:[%s3680_s1 + $0x558] sm:$0xff]  }
  0x7e   :  { %2652 = vmatprep.subr.bf16.mxu1 %v2916_v15  ;;  %v2976_v15 = vld [vmem:[%s3680_s1 + $0x5d8] sm:$0xff]  }
  0x80   :  { %2631 = vmatpush3.bf16.msra.mxu0 %v2917_v16  ;;  %v2977_v16 = vld [vmem:[%s3680_s1 + $0x518] sm:$0xff]  }
  0x81   :  { %2653 = vmatpush3.bf16.msra.mxu1 %v2918_v17  ;;  %2660 = vmatprep.subr.bf16.mxu0 %v2923_v23  ;;  %v2978_v17 = vld [vmem:[%s3680_s1 + $0x598] sm:$0xff]   ;;  %v2984_v23 = vld [vmem:[%s3680_s1 + $0x5c8] sm:$0xff]  }
  0x82   :  { %2682 = vmatprep.subr.bf16.mxu1 %v2924_v25  ;;  %v2986_v25 = vld [vmem:[%s3680_s1 + $0x588] sm:$0xff]  }
  0x83   :  { %1933 = vmatmul.mubr.bf16.vlgmr.msra.gmra.mxu0 %v2271_v20  ;;  %v2981_v20 = vld [vmem:[%s3680_s1 + $0x510] sm:$0xff]  }
  0x84   :  { %1973 = vmatmul.mubr.bf16.vlgmr.msra.gmra.mxu1 %v2273_v22  ;;  %2661 = vmatpush3.bf16.msra.mxu0 %v2925_v26  ;;  %v2983_v22 = vld [vmem:[%s3680_s1 + $0x548] sm:$0xff]   ;;  %v2987_v26 = vld [vmem:[%s3680_s1 + $0x540] sm:$0xff]  }
  0x85   :  { %2683 = vmatpush3.bf16.msra.mxu1 %v2926_v27  ;;  %2662 = vmatprep.subr.bf16.mxu0 %v2927_v28  ;;  %v2988_v27 = vld [vmem:[%s3680_s1 + $0x5c0] sm:$0xff]  }
  0x86   :  { %2684 = vmatprep.subr.bf16.mxu1 %v2928_v29  ;;  %2012 = vmatprep.mubr.bf16.mxu0 %v2276_v58  ;;  %v2989_v28 = vld [vmem:[%s3680_s1 + $0x500] sm:$0xff]  }
  0x87   :  { %2052 = vmatprep.mubr.bf16.mxu1 %v2278_v61  ;;  %v2990_v29 = vld [vmem:[%s3680_s1 + $0x580] sm:$0xff]   ;;  %v3000_v61 = vld [vmem:[%s3683_s3 + $0x10] sm:$0xff]  }
  0x88   :  { %2663 = vmatpush3.bf16.msra.mxu0 %v2929_v30  ;;  %v31_v30 = vld [vmem:[%s3681_s0 + $0x50] sm:$0xff] }
  0x89   :  { %2685 = vmatpush3.bf16.msra.mxu1 %v2930_v31  ;;  %2664 = vmatprep.subr.bf16.mxu0 %v2931_v32  ;;  %v32_v31 = vld [vmem:[%s3681_s0 + $0x58] sm:$0xff]  ;;  %v2279_v32 = vcombine.low %v31_v30, %v31_v30 }
  0x8a   :  { %2686 = vmatprep.subr.bf16.mxu1 %v2932_v33  ;;  %v2280_v33 = vcombine.high %v31_v30, %v31_v30 }
  0x8c   :  { %2665 = vmatpush3.bf16.msra.mxu0 %v2933_v34  ;;  %v2281_v34 = vcombine.low %v32_v31, %v32_v31 }
  0x8d   :  { %2687 = vmatpush3.bf16.msra.mxu1 %v2934_v35  ;;  %2666 = vmatprep.subr.bf16.mxu0 %v2935_v36  ;;  %v2282_v35 = vcombine.high %v32_v31, %v32_v31 }
  0x8e   :  { %2688 = vmatprep.subr.bf16.mxu1 %v2936_v37 }
  0x90   :  { %2667 = vmatpush3.bf16.msra.mxu0 %v2937_v38  ;;  %v2258_v38 = vld [vmem:[%s3682_s2] ss:$0 sm:$0xff] }
  0x91   :  { %2689 = vmatpush3.bf16.msra.mxu1 %v2938_v39  ;;  %2668 = vmatprep.subr.bf16.mxu0 %v2939_v40 }
  0x92   :  { %2690 = vmatprep.subr.bf16.mxu1 %v2940_v41 }
  0x94   :  { %2669 = vmatpush3.bf16.msra.mxu0 %v2941_v42 }
  0x95   :  { %2691 = vmatpush3.bf16.msra.mxu1 %v2942_v43  ;;  %2670 = vmatprep.subr.bf16.mxu0 %v2943_v44 }
  0x96   :  { %2692 = vmatprep.subr.bf16.mxu1 %v2944_v45 }
  0x98   :  { %2671 = vmatpush3.bf16.msra.mxu0 %v2945_v46 }
  0x99   :  { %2693 = vmatpush3.bf16.msra.mxu1 %v2946_v47  ;;  %2672 = vmatprep.subr.bf16.mxu0 %v2947_v48 }
  0x9a   :  { %2694 = vmatprep.subr.bf16.mxu1 %v2948_v49  ;;  %v3003_v49 = vmov 0.0  }
  0x9c   :  { %2673 = vmatpush3.bf16.msra.mxu0 %v2949_v50  ;;  %v2995_v50 = vld [vmem:[%s3683_s3 + $0x38] sm:$0xff]  }
  0x9d   :  { %2695 = vmatpush3.bf16.msra.mxu1 %v2950_v51  ;;  %2674 = vmatprep.subr.bf16.mxu0 %v2951_v52  ;;  %v2996_v51 = vld [vmem:[%s3683_s3 + $0x30] sm:$0xff]   ;;  %v2997_v52 = vld [vmem:[%s3683_s3 + $0x28] sm:$0xff]  }
  0x9e   :  { %2696 = vmatprep.subr.bf16.mxu1 %v2952_v53  ;;  %v2998_v53 = vld [vmem:[%s3683_s3 + $0x20] sm:$0xff]  }
  0xa0   :  { %2675 = vmatpush3.bf16.msra.mxu0 %v2953_v54  ;;  %v2999_v54 = vld [vmem:[%s3683_s3 + $0x18] sm:$0xff]  }
  0xa1   :  { %2697 = vmatpush3.bf16.msra.mxu1 %v2954_v55  ;;  %2704 = vmatprep.subr.bf16.mxu0 %v2959_v62 }
  0xa2   :  { %2726 = vmatprep.subr.bf16.mxu1 %v2960_v63 }
  0xa3   :  { %2013 = vmatmul.mubr.bf16.vlgmr.msra.gmra.mxu0 %v2275_v57 }
  0xa4   :  { %2053 = vmatmul.mubr.bf16.vlgmr.msra.gmra.mxu1 %v2277_v60  ;;  %2705 = vmatpush3.bf16.msra.mxu0 %v2961_v0 }
  0xa5   :  { %2727 = vmatpush3.bf16.msra.mxu1 %v2962_v1  ;;  %2706 = vmatprep.subr.bf16.mxu0 %v2963_v2 }
  0xa6   :  { %2728 = vmatprep.subr.bf16.mxu1 %v2964_v3  ;;  %2092 = vmatprep.mubr.bf16.mxu0 %v2280_v33 }
  0xa7   :  { %2132 = vmatprep.mubr.bf16.mxu1 %v2282_v35 }
  0xa8   :  { %2707 = vmatpush3.bf16.msra.mxu0 %v2965_v4  ;;  %v3001_v4 = vld [vmem:[%s3683_s3 + $0x8] sm:$0xff]  }
  0xa9   :  { %2729 = vmatpush3.bf16.msra.mxu1 %v2966_v5  ;;  %2708 = vmatprep.subr.bf16.mxu0 %v2967_v6  ;;  %v3002_v5 = vld [vmem:[%s3683_s3] sm:$0xff]  }
  0xaa   :  { %2730 = vmatprep.subr.bf16.mxu1 %v2968_v7 }
  0xac   :  { %2709 = vmatpush3.bf16.msra.mxu0 %v2969_v8 }
  0xad   :  { %2731 = vmatpush3.bf16.msra.mxu1 %v2970_v9  ;;  %2710 = vmatprep.subr.bf16.mxu0 %v2971_v10 }
  0xae   :  { %2732 = vmatprep.subr.bf16.mxu1 %v2972_v11 }
  0xb0   :  { %2711 = vmatpush3.bf16.msra.mxu0 %v2973_v12 }
  0xb1   :  { %2733 = vmatpush3.bf16.msra.mxu1 %v2974_v13  ;;  %2712 = vmatprep.subr.bf16.mxu0 %v2975_v14 }
  0xb2   :  { %2734 = vmatprep.subr.bf16.mxu1 %v2976_v15 }
  0xb4   :  { %2713 = vmatpush3.bf16.msra.mxu0 %v2977_v16 }
  0xb5   :  { %2735 = vmatpush3.bf16.msra.mxu1 %v2978_v17  ;;  %2714 = vmatprep.subr.bf16.mxu0 %v2979_v18 }
  0xb6   :  { %2736 = vmatprep.subr.bf16.mxu1 %v2980_v19 }
  0xb8   :  { %2715 = vmatpush3.bf16.msra.mxu0 %v2981_v20 }
  0xb9   :  { %2737 = vmatpush3.bf16.msra.mxu1 %v2982_v21  ;;  %2716 = vmatprep.subr.bf16.mxu0 %v2983_v22 }
  0xba   :  { %2738 = vmatprep.subr.bf16.mxu1 %v2984_v23 }
  0xbc   :  { %2717 = vmatpush3.bf16.msra.mxu0 %v2985_v24 }
  0xbd   :  { %2739 = vmatpush3.bf16.msra.mxu1 %v2986_v25  ;;  %2718 = vmatprep.subr.bf16.mxu0 %v2987_v26 }
  0xbe   :  { %2740 = vmatprep.subr.bf16.mxu1 %v2988_v27 }
  0xc0   :  { %2719 = vmatpush3.bf16.msra.mxu0 %v2989_v28 }
  0xc1   :  { %2741 = vmatpush3.bf16.msra.mxu1 %v2990_v29  ;;  %2757 = vmatprep.subr.bf16.mxu0 %v3003_v49 }
  0xc3   :  { %2093 = vmatmul.mubr.bf16.vlgmr.msra.gmra.mxu0 %v2279_v32 }
  0xc4   :  { %2133 = vmatmul.mubr.bf16.vlgmr.msra.gmra.mxu1 %v2281_v34  ;;  %2758 = vmatpush3.bf16.msra.mxu0 %v2995_v50 }
  0xc5   :  { %2759 = vmatprep.subr.bf16.mxu0 %v3003_v49  ;;  %2773 = vmatprep.mubr.msk.bf16.mxu0 %vm3004_vm0, %v3003_v49 }
  0xc8   :  { %2760 = vmatpush3.bf16.msra.mxu0 %v2996_v51 }
  0xc9   :  { %2761 = vmatprep.subr.bf16.mxu0 %v3003_v49 }
  0xcc   :  { %2762 = vmatpush3.bf16.msra.mxu0 %v2997_v52 }
  0xcd   :  { %2763 = vmatprep.subr.bf16.mxu0 %v3003_v49 }
  0xd0   :  { %2764 = vmatpush3.bf16.msra.mxu0 %v2998_v53 }
  0xd1   :  { %2765 = vmatprep.subr.bf16.mxu0 %v3003_v49 }
  0xd4   :  { %2766 = vmatpush3.bf16.msra.mxu0 %v2999_v54 }
  0xd5   :  { %2767 = vmatprep.subr.bf16.mxu0 %v3003_v49 }
  0xd8   :  { %2768 = vmatpush3.bf16.msra.mxu0 %v3000_v61 }
  0xd9   :  { %2769 = vmatprep.subr.bf16.mxu0 %v3003_v49 }
  0xdc   :  { %2770 = vmatpush3.bf16.msra.mxu0 %v3001_v4 }
  0xdd   :  { %2771 = vmatprep.subr.bf16.mxu0 %v3003_v49 }
  0xe0   :  { %2772 = vmatpush3.bf16.msra.mxu0 %v3002_v5 }
  0xe3   :  { %v2500_v36 = vpop.f32.mrf.mxu0 }
  0xe4   :  { %v2522_v37 = vpop.f32.mrf.mxu1 }
  0xe5   :  { %v2501_v39 = vpop.f32.mrf.mxu0 }
  0xe6   :  { %v2523_v40 = vpop.f32.mrf.mxu1  ;;  %v2502_v41 = vadd.f32 %v2501_v39, %v2500_v36 }
  0xe7   :  { %v2524_v42 = vadd.f32 %v2523_v40, %v2522_v37  ;;  %v2503_v43 = vpop.f32.mrf.mxu0 }
  0xe8   :  { %v2525_v44 = vpop.f32.mrf.mxu1  ;;  %v1695_v45 = vadd.f32 %v2502_v41, %v2258_v38 }
  0xe9   :  { %v2504_v46 = vpop.f32.mrf.mxu0 }
  0xea   :  { %v2526_v47 = vpop.f32.mrf.mxu1  ;;  %v1735_v48 = vadd.f32 %v2524_v42, %v1695_v45 }
 0x103   :  { %v2544_v55 = vpop.f32.mrf.mxu0 }
 0x104   :  { %v2566_v56 = vpop.f32.mrf.mxu1 }
 0x105   :  { %v2545_v57 = vpop.f32.mrf.mxu0 }
 0x106   :  { %v2567_v58 = vpop.f32.mrf.mxu1  ;;  %v2546_v59 = vadd.f32 %v2545_v57, %v2544_v55 }
 0x107   :  { %v2568_v60 = vadd.f32 %v2567_v58, %v2566_v56  ;;  %v2547_v62 = vpop.f32.mrf.mxu0  ;;  %v2475_v56 = vld [vmem:[%s3684_s4] ss:$0 sm:$0xff] }
 0x108   :  { %v2569_v63 = vpop.f32.mrf.mxu1  ;;  %v1775_v0 = vadd.f32 %v2546_v59, %v1735_v48 }
 0x109   :  { %v2548_v1 = vpop.f32.mrf.mxu0 }
 0x10a   :  { %v2570_v2 = vpop.f32.mrf.mxu1  ;;  %v1815_v3 = vadd.f32 %v2568_v60, %v1775_v0 }
 0x123   :  { %v2588_v6 = vpop.f32.mrf.mxu0 }
 0x124   :  { %v2610_v7 = vpop.f32.mrf.mxu1 }
 0x125   :  { %v2589_v8 = vpop.f32.mrf.mxu0 }
 0x126   :  { %v2590_v9 = vadd.f32 %v2589_v8, %v2588_v6  ;;  %v2611_v10 = vpop.f32.mrf.mxu1 }
 0x127   :  { %v2612_v11 = vadd.f32 %v2611_v10, %v2610_v7  ;;  %v2591_v12 = vpop.f32.mrf.mxu0 }
 0x128   :  { %v1855_v13 = vadd.f32 %v2590_v9, %v1815_v3  ;;  %v2613_v14 = vpop.f32.mrf.mxu1 }
 0x129   :  { %v2592_v15 = vpop.f32.mrf.mxu0 }
 0x12a   :  { %v1895_v16 = vadd.f32 %v2612_v11, %v1855_v13  ;;  %v2614_v17 = vpop.f32.mrf.mxu1 }
 0x143   :  { %v2632_v18 = vpop.f32.mrf.mxu0 }
 0x144   :  { %v2654_v19 = vpop.f32.mrf.mxu1 }
 0x145   :  { %v2633_v20 = vpop.f32.mrf.mxu0 }
 0x146   :  { %v2655_v21 = vpop.f32.mrf.mxu1  ;;  %v2634_v34 = vadd.f32 %v2633_v20, %v2632_v18 }
 0x147   :  { %v2635_v22 = vpop.f32.mrf.mxu0  ;;  %v2656_v36 = vadd.f32 %v2655_v21, %v2654_v19 }
 0x148   :  { %v2657_v23 = vpop.f32.mrf.mxu1  ;;  %v1935_v35 = vadd.f32 %v2634_v34, %v1895_v16 }
 0x149   :  { %v2636_v24 = vpop.f32.mrf.mxu0 }
 0x14a   :  { %v2658_v25 = vpop.f32.mrf.mxu1  ;;  %v1975_v38 = vadd.f32 %v2656_v36, %v1935_v35 }
 0x163   :  { %v2676_v26 = vpop.f32.mrf.mxu0 }
 0x164   :  { %v2698_v27 = vpop.f32.mrf.mxu1 }
 0x165   :  { %v2677_v28 = vpop.f32.mrf.mxu0 }
 0x166   :  { %v2699_v29 = vpop.f32.mrf.mxu1  ;;  %v2678_v37 = vadd.f32 %v2677_v28, %v2676_v26 }
 0x167   :  { %v2679_v30 = vpop.f32.mrf.mxu0  ;;  %v2700_v40 = vadd.f32 %v2699_v29, %v2698_v27 }
 0x168   :  { %v2701_v31 = vpop.f32.mrf.mxu1  ;;  %v2015_v39 = vadd.f32 %v2678_v37, %v1975_v38 }
 0x169   :  { %v2680_v32 = vpop.f32.mrf.mxu0 }
 0x16a   :  { %v2702_v33 = vpop.f32.mrf.mxu1  ;;  %v2055_v44 = vadd.f32 %v2700_v40, %v2015_v39 }
 0x183   :  { %v2720_v41 = vpop.f32.mrf.mxu0 }
 0x184   :  { %v2742_v42 = vpop.f32.mrf.mxu1 }
 0x185   :  { %v2721_v43 = vpop.f32.mrf.mxu0 }
 0x186   :  { %v2722_v45 = vadd.f32 %v2721_v43, %v2720_v41  ;;  %v2743_v46 = vpop.f32.mrf.mxu1 }
 0x187   :  { %v2723_v47 = vpop.f32.mrf.mxu0  ;;  %v2744_v49 = vadd.f32 %v2743_v46, %v2742_v42 }
 0x188   :  { %v2095_v48 = vadd.f32 %v2722_v45, %v2055_v44  ;;  %v2745_v50 = vpop.f32.mrf.mxu1 }
 0x189   :  { %v2724_v51 = vpop.f32.mrf.mxu0 }
 0x18a   :  { %v2135_v52 = vadd.f32 %v2744_v49, %v2095_v48  ;;  %v2746_v53 = vpop.f32.mrf.mxu1 }
 0x18c   :  { %v2140_v54 = vmax.f32 %v2135_v52, 0.0 }
 0x18e   :  { %v2141_v55 = vpack.c.bf16 %v2140_v54, %v2140_v54 }
 0x190   :  { %2774 = vmatmul.mubr.bf16.vlgmr.msra.gmra.mxu0 %v2141_v55 }
 0x250   :  { %v2247_v57 = vpop.f32.mrf.mxu0 }
 0x251   :  { %v2248_v58 = vadd.f32 %v2475_v56, %v2247_v57 }
 0x252   :  { %v2775_v59 = vpop.f32.mrf.mxu0 }
 0x253   :  { %2253 = vst [vmem:[%s3685_s5] sm:$0xff] %v2248_v58 }
 0x254   :  { %v2250_v60 = vpop.f32.mrf.mxu0 }
 0x256   :  { %v2776_v61 = vpop.f32.mrf.mxu0 }

</bundles_post_ra>
